<compile_context>
chip_gen: v7x
topology: tpu7x:2x2x1
jax: 0.10.0
libtpu: 0.0.40
codegen_flags: <defaults>
</compile_context>

<pallas_src>
import functools

import jax
import jax.numpy as jnp
from jax.experimental import pallas as pl
from jax.experimental.pallas import tpu as pltpu

K = 2  # module-level `k = 2` in the reference script


def _fourier_kernel(x_ref, a_ref, b_ref, o_ref, *, k, d):
    # x_ref: (TB, d)      -- a tile of batch rows
    # a_ref: (k, d*d)     -- flattened params, resident in VMEM
    # b_ref: (k, d*d)
    # o_ref: (TB, d*d)    -- lane-dense output tile
    x = x_ref[...]                      # (TB, d) float32
    tb = x.shape[0]
    dd = d * d

    # Base frequency once per element on the EUP.
    cos_m = jnp.cos(x)                  # cos(1*x)
    sin_m = jnp.sin(x)                  # sin(1*x)
    cos1, sin1 = cos_m, sin_m

    def lane_expand(v):
        # (TB, d) -> (TB, d*d) with flat[:, i*d + j] = v[:, j]
        # (lane replication matching the i-major / j-minor output layout).
        return jnp.broadcast_to(v[:, None, :], (tb, d, d)).reshape(tb, dd)

    # m = 0 term initializes the accumulator directly (no zero-fill).
    acc = (lane_expand(cos_m) * a_ref[pl.ds(0, 1), :]
           + lane_expand(sin_m) * b_ref[pl.ds(0, 1), :])

    # k is tiny and static -> unrolled Python loop. Higher harmonics via the
    # angle-addition recurrence (pure VPU muls/adds; keeps the single EUP
    # slot off the critical path).
    for m in range(1, k):
        cos_m, sin_m = (cos_m * cos1 - sin_m * sin1,
                        sin_m * cos1 + cos_m * sin1)
        acc = acc + (lane_expand(cos_m) * a_ref[pl.ds(m, 1), :]
                     + lane_expand(sin_m) * b_ref[pl.ds(m, 1), :])

    o_ref[...] = acc.astype(o_ref.dtype)


def fourier_feature(x, a, b, *, k=K, block_rows=512):
    """x: (N, d) f32; a, b: (d, d, k) f32 (PyTorch layout). Returns (N, d, d) f32."""
    N, d = x.shape
    dd = d * d

    # Cheap XLA-side layout glue: params -> (k, d*d), flat index = i*d + j.
    a_flat = jnp.transpose(a, (2, 0, 1)).reshape(k, dd)
    b_flat = jnp.transpose(b, (2, 0, 1)).reshape(k, dd)

    def _round_up(v, m):
        return ((v + m - 1) // m) * m

    # Row-tile size: amortize per-step overhead; prefer >= 2 grid steps
    # (v7x has 2 TensorCores) when the batch is big enough; keep the padded
    # batch within one sublane group of N.
    tb0 = min(block_rows, _round_up(N, 8))
    num_steps = max(2, pl.cdiv(N, tb0)) if N > 8 else 1
    TB = _round_up(pl.cdiv(N, num_steps), 8)
    N_pad = num_steps * TB

    x_p = x if N_pad == N else jnp.pad(x, ((0, N_pad - N), (0, 0)))

    kernel = functools.partial(_fourier_kernel, k=k, d=d)
    out_flat = pl.pallas_call(
        kernel,
        out_shape=jax.ShapeDtypeStruct((N_pad, dd), jnp.float32),
        grid_spec=pltpu.PrefetchScalarGridSpec(
            num_scalar_prefetch=0,
            grid=(num_steps,),
            in_specs=[
                pl.BlockSpec((TB, d), lambda n: (n, 0)),   # x row tile
                pl.BlockSpec((k, dd), lambda n: (0, 0)),   # a (constant map -> resident)
                pl.BlockSpec((k, dd), lambda n: (0, 0)),   # b (constant map -> resident)
            ],
            out_specs=pl.BlockSpec((TB, dd), lambda n: (n, 0)),
        ),
        compiler_params=pltpu.CompilerParams(
            dimension_semantics=("parallel",),
        ),
        cost_estimate=pl.CostEstimate(
            flops=4 * N_pad * dd * k,
            transcendentals=2 * N_pad * d,   # one cos + sin per input element
            bytes_accessed=N_pad * dd * 4 + N_pad * d * 4 + 2 * k * dd * 4,
        ),
    )(x_p, a_flat, b_flat)

    # TODO(synk): if downstream tolerates bf16, store bf16 output to halve HBM
    # write traffic (kept f32 here to match the PyTorch contract).
    return out_flat[:N].reshape(N, d, d)


def fourier_feature_ref(x, a, b, *, k=K):
    """Pure-JAX reference mirroring the PyTorch broadcast exactly."""
    freqs = jnp.arange(1, k + 1, dtype=jnp.float32)            # (k,)
    cos_part = jnp.cos(x[..., None] * freqs)                   # (N, d, k)
    sin_part = jnp.sin(x[..., None] * freqs)                   # (N, d, k)
    cos_part = cos_part[:, None, :, :] * a                     # (N, d, d, k)
    sin_part = sin_part[:, None, :, :] * b                     # (N, d, d, k)
    return cos_part.sum(-1) + sin_part.sum(-1)                 # (N, d, d)


if __name__ == "__main__":
    # Small shapes consistent with the forward pass: x (N, d), params (d, d, k).
    N, d, num_heads = 16, 32, 4   # num_heads is unused by forward
    key = jax.random.PRNGKey(0)
    kx, ka, kb = jax.random.split(key, 3)

    x = jax.random.normal(kx, (N, d), dtype=jnp.float32)
    a = jax.random.normal(ka, (d, d, K), dtype=jnp.float32)   # nn.Parameter(randn(d,d,k))
    b = jax.random.normal(kb, (d, d, K), dtype=jnp.float32)

    out = jax.block_until_ready(fourier_feature(x, a, b, k=K))

    ref = fourier_feature_ref(x, a, b, k=K)
    assert out.shape == (N, d, d)
    assert jnp.allclose(out, ref, atol=1e-5, rtol=1e-5), float(jnp.abs(out - ref).max())

    print("KERNEL_OK")
</pallas_src>

<mosaic_0001>
module attributes {stable_mosaic.version = 11 : i64} {
  func.func @_fourier_kernel(%arg0: i32, %arg1: memref<8x32xf32, #tpu.memory_space<vmem>>, %arg2: memref<2x1024xf32, #tpu.memory_space<vmem>>, %arg3: memref<2x1024xf32, #tpu.memory_space<vmem>>, %arg4: memref<8x1024xf32, #tpu.memory_space<vmem>>) attributes {dimension_semantics = [#tpu.dimension_semantics<parallel>], iteration_bounds = array<i64: 2>, scalar_prefetch = 0 : i64, scratch_operands = 0 : i64, tpu.core_type = #tpu.core_type<tc>, window_params = [{transform_indices = @transform_0, window_bounds = array<i64: 8, 32>}, {pipeline_mode = #tpu.pipeline_mode<synchronous>, transform_indices = @transform_1, window_bounds = array<i64: 2, 1024>}, {pipeline_mode = #tpu.pipeline_mode<synchronous>, transform_indices = @transform_2, window_bounds = array<i64: 2, 1024>}, {transform_indices = @transform_3, window_bounds = array<i64: 8, 1024>}]} {
    %c0 = arith.constant 0 : index
    %c0_0 = arith.constant 0 : index
    %0 = vector.load %arg1[%c0, %c0_0] : memref<8x32xf32, #tpu.memory_space<vmem>>, vector<8x32xf32>
    %1 = math.cos %0 : vector<8x32xf32>
    %2 = math.sin %0 : vector<8x32xf32>
    %3 = vector.shape_cast %1 : vector<8x32xf32> to vector<8x1x32xf32>
    %4 = vector.shape_cast %3 : vector<8x1x32xf32> to vector<8x1x32xf32>
    %5 = vector.broadcast %4 : vector<8x1x32xf32> to vector<8x32x32xf32>
    %6 = vector.shape_cast %5 : vector<8x32x32xf32> to vector<8x1024xf32>
    %c0_1 = arith.constant 0 : index
    %c0_2 = arith.constant 0 : index
    %7 = vector.load %arg2[%c0_1, %c0_2] : memref<2x1024xf32, #tpu.memory_space<vmem>>, vector<1x1024xf32>
    %8 = vector.broadcast %7 : vector<1x1024xf32> to vector<8x1024xf32>
    %9 = arith.mulf %6, %8 : vector<8x1024xf32>
    %10 = vector.shape_cast %2 : vector<8x32xf32> to vector<8x1x32xf32>
    %11 = vector.shape_cast %10 : vector<8x1x32xf32> to vector<8x1x32xf32>
    %12 = vector.broadcast %11 : vector<8x1x32xf32> to vector<8x32x32xf32>
    %13 = vector.shape_cast %12 : vector<8x32x32xf32> to vector<8x1024xf32>
    %c0_3 = arith.constant 0 : index
    %c0_4 = arith.constant 0 : index
    %14 = vector.load %arg3[%c0_3, %c0_4] : memref<2x1024xf32, #tpu.memory_space<vmem>>, vector<1x1024xf32>
    %15 = vector.broadcast %14 : vector<1x1024xf32> to vector<8x1024xf32>
    %16 = arith.mulf %13, %15 : vector<8x1024xf32>
    %17 = arith.addf %9, %16 : vector<8x1024xf32>
    %18 = arith.mulf %1, %1 : vector<8x32xf32>
    %19 = arith.mulf %2, %2 : vector<8x32xf32>
    %20 = arith.subf %18, %19 : vector<8x32xf32>
    %21 = arith.mulf %2, %1 : vector<8x32xf32>
    %22 = arith.mulf %1, %2 : vector<8x32xf32>
    %23 = arith.addf %21, %22 : vector<8x32xf32>
    %24 = vector.shape_cast %20 : vector<8x32xf32> to vector<8x1x32xf32>
    %25 = vector.shape_cast %24 : vector<8x1x32xf32> to vector<8x1x32xf32>
    %26 = vector.broadcast %25 : vector<8x1x32xf32> to vector<8x32x32xf32>
    %27 = vector.shape_cast %26 : vector<8x32x32xf32> to vector<8x1024xf32>
    %c1 = arith.constant 1 : index
    %c0_5 = arith.constant 0 : index
    %28 = vector.load %arg2[%c1, %c0_5] : memref<2x1024xf32, #tpu.memory_space<vmem>>, vector<1x1024xf32>
    %29 = vector.broadcast %28 : vector<1x1024xf32> to vector<8x1024xf32>
    %30 = arith.mulf %27, %29 : vector<8x1024xf32>
    %31 = vector.shape_cast %23 : vector<8x32xf32> to vector<8x1x32xf32>
    %32 = vector.shape_cast %31 : vector<8x1x32xf32> to vector<8x1x32xf32>
    %33 = vector.broadcast %32 : vector<8x1x32xf32> to vector<8x32x32xf32>
    %34 = vector.shape_cast %33 : vector<8x32x32xf32> to vector<8x1024xf32>
    %c1_6 = arith.constant 1 : index
    %c0_7 = arith.constant 0 : index
    %35 = vector.load %arg3[%c1_6, %c0_7] : memref<2x1024xf32, #tpu.memory_space<vmem>>, vector<1x1024xf32>
    %36 = vector.broadcast %35 : vector<1x1024xf32> to vector<8x1024xf32>
    %37 = arith.mulf %34, %36 : vector<8x1024xf32>
    %38 = arith.addf %30, %37 : vector<8x1024xf32>
    %39 = arith.addf %17, %38 : vector<8x1024xf32>
    %c0_8 = arith.constant 0 : index
    %c0_9 = arith.constant 0 : index
    %40 = vector.load %arg4[%c0_8, %c0_9] : memref<8x1024xf32, #tpu.memory_space<vmem>>, vector<8x1024xf32>
    tpu.vector_store %arg4[%c0_8, %c0_9], %39 {strides = array<i32>} : memref<8x1024xf32, #tpu.memory_space<vmem>>, vector<8x1024xf32>,
    return
  }
  func.func @transform_0(%arg0: i32) -> (i32, i32) {
    %c0_i32 = arith.constant 0 : i32
    %c0_i32_0 = arith.constant 0 : i32
    return %arg0, %c0_i32 : i32, i32
  }
  func.func @transform_1(%arg0: i32) -> (i32, i32) {
    %c0_i32 = arith.constant 0 : i32
    %c0_i32_0 = arith.constant 0 : i32
    %c0_i32_1 = arith.constant 0 : i32
    return %c0_i32, %c0_i32_0 : i32, i32
  }
  func.func @transform_2(%arg0: i32) -> (i32, i32) {
    %c0_i32 = arith.constant 0 : i32
    %c0_i32_0 = arith.constant 0 : i32
    %c0_i32_1 = arith.constant 0 : i32
    return %c0_i32, %c0_i32_0 : i32, i32
  }
  func.func @transform_3(%arg0: i32) -> (i32, i32) {
    %c0_i32 = arith.constant 0 : i32
    %c0_i32_0 = arith.constant 0 : i32
    return %arg0, %c0_i32 : i32, i32
  }
}

</mosaic_0001>

<bundles_post_ra>
// kernel: tpu_custom_call.1
= control target key start
LH: loop header
LB: loop body
LE: loop exit
PB: predicated region body
PF: predicated region fallthrough
CT: control target
= control target key end

     0   :  { %8 = vsyncpa [#allocation3], 0  ;;  %s2763_s0 = inlined_call_operand.hbm [shape: f32[16,32], index: 0, kind: input, shape index: {}]   ;;  %s2764_s1 = inlined_call_operand.hbm [shape: f32[2,1024], index: 1, kind: input, shape index: {}]   ;;  %s2765_s2 = inlined_call_operand.hbm [shape: f32[2,1024], index: 2, kind: input, shape index: {}]   ;;  %s2766_s3 = inlined_call_operand.hbm [shape: f32[16,1024], index: 3, kind: output, shape index: {}]  }
   0x1   :  { %10 = vsyncpa [#allocation3 + $0x1], 0 }
   0x2   :  { %11 = vsyncpa [#allocation6], 0 }
   0x3   :  { %12 = vsyncpa [#allocation4], 0 }
   0x4   :  { %14 = vsyncpa [#allocation4 + $0x1], 0  ;;  %s2096_s12 = smov 0   ;;  %s2098_s13 = smov 0  }
   0x5   :  { %s2100_s14 = smov 0   ;;  %s2102_s15 = smov 0  }
   0x6 LB: > { %s2117_s16 = sadd.s32 4294967295, %s2058_s15   ;;  %s1789_s17 = sadd.s32 4294967294, %s2058_s15   ;;  %s2058_s15 = sphi %s2102_s15, %s2786_s15   ;;  %s2054_s14 = sphi %s2100_s14, %s2785_s14   ;;  %s2050_s13 = sphi %s2098_s13, %s2784_s13   ;;  %s2046_s12 = sphi %s2096_s12, %s2783_s12  }
   0x7   : > { %p40_p0 = scmp.ne.s32.totalorder %s2050_s13, %s2046_s12  ;;  %p2767_p1 = scmp.eq.s32.totalorder %s2117_s16, 0 }
   0x8   : > { %p112_p3 = scmp.eq.s32.totalorder %s1789_s17, 1  ;;  %p1790_p5 = scmp.ge.s32.totalorder %s2058_s15, 1 }
   0x9   : > { %p2126_p4 = por %p2767_p1, %p40_p0  ;;  %p119_p7 = scmp.lt.s32.totalorder %s2058_s15, 3 }
   0xa   : > { %p2131_p6 = por %p112_p3, %p40_p0  ;;  %s2060_s21 = smov [#allocation5]  }
   0xb   : > { %s2770_s18 = scalar_select %p2126_p4, 1, 0 }
   0xc   : > { %s2771_s19 = scalar_select %p2131_p6, 1, 0 }
   0xd   : > { %p2136_p8 = pnand %p1790_p5, %p119_p7  ;;  %s132_s22 = sshll.u32 %s2060_s21, 4  ;;  %s133_s22 = int_to_ptr.vmem [resolvable:$true] %s132_s22 }
   0xe   : > { %s2061_s23 = smov [#allocation7]   ;;  %s2152_s26 = sadd.s32 1, %s2058_s15  }
   0xf   : > { %s2772_s20 = scalar_select %p2136_p8, 1, 0 }
  0x10   : > { %p1831_p10 = pneg %p2136_p8  ;;  %s143_s24 = sshll.u32 %s2061_s23, 4  ;;  %s2149_s24 = int_to_ptr.vmem [resolvable:$true] %s143_s24 }
  0x11   : > { %s24_s27 = ssub.s32 %s2058_s15, %s2152_s26  ;;  %s1902_s30 = scalar_lea.hbm %s2764_s1, 256 }
  0x12   : > { %p2145_p11 = pnand %p1831_p10, %p2767_p1  ;;  %p1903_p12 = scmp.ne.s32.totalorder %s2764_s1, %s1902_s30 }
  0x13   : > { %p1909_p5 = scmp.lt.u32.totalorder %s1902_s30, %s2764_s1 }
  0x14   : > { %p1904_p13 = pneg %p2145_p11 }
  0x16   : > { %p1905_p0 = pnand %p1904_p13, %p1903_p12 }
  0x18   : > { %p1906_p3 = pneg %p1905_p0 }
  0x1a   : > { %p1911_p7 = pnand %p1909_p5, %p1906_p3 }
  0x1c   : > { %1914 = shalt.err (!%p1911_p7)
}
  0x1d   : > { %s1915_s8 = scalar_lea.vmem %s133_s22, 256  ;;  %p1923_p2 = scmp.lt.s32.totalorder %s133_s22, %s133_s22 }
  0x1e   : > { %p1916_p10 = scmp.ne.s32.totalorder %s133_s22, %s1915_s8  ;;  %p1924_p6 = scmp.lt.s32.totalorder %s1915_s8, %s1915_s8 }
  0x20   : > { %p1918_p9 = pnand %p1916_p10, %p1904_p13  ;;  %p1925_p4 = por %p1924_p6, %p1923_p2 }
  0x22   : > { %p1919_p1 = pneg %p1918_p9 }
  0x24   : > { %p1926_p8 = pnand %p1925_p4, %p1919_p1 }
  0x26   : > { %1929 = shalt.err (!%p1926_p8)
}
  0x27   : > { %1834 = dma.hbm_to_vmem [thread:$0]  (!%p2145_p11), %s2764_s1, 256, %s133_s22, [#allocation6]  }
  0x28   : > { %s1930_s21 = scalar_lea.hbm %s2765_s2, 256 }
  0x29   : > { %p1931_p9 = scmp.ne.s32.totalorder %s2765_s2, %s1930_s21  ;;  %p1937_p4 = scmp.lt.u32.totalorder %s1930_s21, %s2765_s2 }
  0x2b   : > { %p1933_p2 = pnand %p1931_p9, %p1904_p13 }
  0x2d   : > { %p1934_p1 = pneg %p1933_p2 }
  0x2f   : > { %p1939_p6 = pnand %p1937_p4, %p1934_p1 }
  0x31   : > { %1942 = shalt.err (!%p1939_p6)
}
  0x32   : > { %s1943_s22 = scalar_lea.vmem %s2149_s24, 256  ;;  %p1951_p3 = scmp.lt.s32.totalorder %s2149_s24, %s2149_s24 }
  0x33   : > { %p1944_p8 = scmp.ne.s32.totalorder %s2149_s24, %s1943_s22  ;;  %p1952_p5 = scmp.lt.s32.totalorder %s1943_s22, %s1943_s22 }
  0x35   : > { %p1946_p12 = pnand %p1944_p8, %p1904_p13  ;;  %p1953_p7 = por %p1952_p5, %p1951_p3 }
  0x37   : > { %p1947_p0 = pneg %p1946_p12 }
  0x39   : > { %p1954_p10 = pnand %p1953_p7, %p1947_p0 }
  0x3b   : > { %1957 = shalt.err (!%p1954_p10)
}
  0x3c   : > { %1837 = dma.hbm_to_vmem [thread:$0]  (!%p2145_p11), %s2765_s2, 256, %s2149_s24, [#allocation6]  }
  0x3d   : > { %p25_p13 = scmp.eq.s32.totalorder %s24_s27, 0  ;;  %s27_s6 = sadd.s32 1, %s2054_s14 }
  0x3e   : > { %p34_p9 = scmp.ne.s32.totalorder %s2054_s14, %s2050_s13  ;;  %p35_p2 = scmp.eq.s32.totalorder %s2058_s15, 0 }
  0x3f   : > { %s2211_s25 = scalar_select %p25_p13, %s2054_s14, %s27_s6  }
  0x40   : > { %p36_p1 = por %p35_p2, %p34_p9  ;;  %p2774_p4 = scmp.eq.s32.totalorder %s2117_s16, 1 }
  0x41   : > { %p1848_p8 = scmp.lt.s32.totalorder %s2058_s15, 2  ;;  %s154_s8 = sand.u32 1, %s2054_s14  }
  0x42   : > { %p2215_p6 = por %p2774_p4, %p34_p9  ;;  %s1794_s9 = sshll.u32 %s154_s8, 3 }
  0x43   : > { %s1795_s10 = sshll.u32 %s2058_s15, 7  ;;  %s158_s27 = scalar_lea.vmem [#allocation2], %s1794_s9 }
  0x44   : > { %s2225_s24 = scalar_lea.hbm %s2763_s0, %s1795_s10  ;;  %s165_s21 = sshll.u32 %s158_s27, 4  ;;  %s2227_s21 = int_to_ptr.vmem [resolvable:$true] %s165_s21 }
  0x45   : > { %p2229_p11 = pnand %p1848_p8, %p36_p1  ;;  %s155_s28 = scalar_lea.sflag [#allocation3], %s154_s8 }
  0x46   : > { %s1958_s29 = scalar_lea.hbm %s2225_s24, 128  ;;  %s1963_s4 = scalar_lea.hbm %s2763_s0, 256 }
  0x47   : > { %p1959_p12 = scmp.ne.s32.totalorder %s2225_s24, %s1958_s29  ;;  %p1960_p0 = pneg %p2229_p11 }
  0x48   : > { %p1964_p7 = scmp.lt.u32.totalorder %s2225_s24, %s2763_s0  ;;  %p1965_p10 = scmp.lt.u32.totalorder %s1963_s4, %s1958_s29 }
  0x49   : > { %p1961_p3 = pnand %p1960_p0, %p1959_p12  ;;  %p1967_p9 = scmp.lt.u32.totalorder %s1958_s29, %s2225_s24 }
  0x4a   : > { %p1966_p13 = por %p1965_p10, %p1964_p7 }
  0x4b   : > { %p1962_p5 = pneg %p1961_p3 }
  0x4c   : > { %p1968_p2 = por %p1967_p9, %p1966_p13 }
  0x4e   : > { %p1969_p1 = pnand %p1968_p2, %p1962_p5 }
  0x50   : > { %1972 = shalt.err (!%p1969_p1)
}
  0x51   : > { %s1973_s8 = scalar_lea.vmem %s2227_s21, 128  ;;  %s2062_s9 = smov [#allocation2]  }
  0x52   : > { %p1974_p4 = scmp.ne.s32.totalorder %s2227_s21, %s1973_s8  ;;  %s1978_s10 = sshll.u32 %s2062_s9, 4  ;;  %s1979_s10 = int_to_ptr.vmem [resolvable:$false] %s1978_s10 }
  0x53   : > { %s1980_s11 = scalar_lea.vmem %s1979_s10, 256  ;;  %p1981_p3 = scmp.lt.s32.totalorder %s2227_s21, %s1979_s10 }
  0x54   : > { %p1976_p8 = pnand %p1974_p4, %p1960_p0  ;;  %p1982_p7 = scmp.lt.s32.totalorder %s1980_s11, %s1973_s8 }
  0x56   : > { %p1977_p12 = pneg %p1976_p8  ;;  %p1983_p10 = por %p1982_p7, %p1981_p3 }
  0x58   : > { %p1984_p13 = pnand %p1983_p10, %p1977_p12 }
  0x5a   : > { %1987 = shalt.err (!%p1984_p13)
}
  0x5b   : > { %1841 = dma.hbm_to_vmem [thread:$0]  (!%p2229_p11), %s2225_s24, 128, %s2227_s21, %s155_s28  }
  0x5c   : > { %p2777_p5 = scmp.ne.s32.totalorder %s2772_s20, 0 }
  0x5d   : > { %s2261_s17 = sand.u32 (!%p2777_p5), 1, %s2050_s13   ;;  %p2778_p0 = scmp.ne.s32.totalorder (!%p2777_p5), %s2770_s18, 0 }
  0x5e   : > { %174 = sbr.rel (%p2777_p5) target bundleno = 403 (0x193), region = 32  ;;  %s1797_s27 = sshll.u32 (!%p2777_p5), %s2261_s17, 3 }
  0x5f   : > { %s177_s29 = scalar_lea.sflag (!%p2777_p5), [#allocation3], %s2261_s17  ;;  %s180_s30 = scalar_lea.vmem (!%p2777_p5), [#allocation2], %s1797_s27 }
  0x65   : > { %2033 = dma.done.wait (%p2778_p0), %s177_s29, 128  }
  0x66   : > { %2035 = vsyncadd (%p2778_p0), %s177_s29, 4294967168  ;;  %p2779_p9 = scmp.eq.s32.totalorder %s2117_s16, 0 }
  0x68   : > { %2037 = dma.done.wait (%p2779_p9), [#allocation6], 512   ;;  %p2780_p11 = pmov %p2779_p9 }
  0x69   : > { %v2273_v0 = vld [vmem:[%s180_s30] sm:$0xff]  ;;  %v2063_v12 = vmov 683565275   ;;  %v2064_v14 = vmov 2475754826   ;;  %s2072_s18 = smov 32  }
  0x6a   : > { %2039 = vsyncadd (%p2780_p11), [#allocation6], 4294966784  ;;  %v215_v1 = vand.u32 2139095040, %v2273_v0  ;;  %v212_v3 = vand.u32 2147483647, %v2273_v0  ;;  %vm214_vm7 = vcmp.lt.s32.totalorder %v2273_v0, 0  ;;  %vm304_vm15 = vweird.f32 %v2273_v0 }
  0x6b   : > { %v2065_v16 = vmov 2131351028   ;;  %v2066_v18 = vmov 2102212464   ;;  %v2067_v20 = vmov 920167782  }
  0x6c   : > { %v216_v2 = vshrl.u32 %v215_v1, 23  ;;  %v219_v6 = vand.u32 8388607, %v212_v3  ;;  %v2068_v27 = vmov 1326507024   ;;  %s2073_s20 = smov 64  }
  0x6d   : > { %vm213_vm8 = vcmp.le.f32.partialorder %v212_v3, 0.7853982  ;;  %s2074_s24 = smov 96   ;;  %s1800_s21 = sshll.u32 %s2261_s17, 6 }
  0x6e   : > { %v1801_v4 = vadd.s32 4294967169, %v216_v2  ;;  %v220_v9 = vor.u32 8388608, %v219_v6  ;;  %s1814_s23 = sshll.u32 %s2117_s16, 10  ;;  %s210_s28 = scalar_lea.vmem [#allocation8], %s1800_s21 }
  0x6f   : > { %s1700_s22 = sshll.u32 %s210_s28, 4  ;;  %s2719_s5 = scalar_lea.hbm %s2766_s3, %s1814_s23  ;;  %s2721_s22 = int_to_ptr.vmem [resolvable:$true] %s1700_s22 }
  0x70   : > { %v222_v5 = vadd.s32 1, %v1801_v4  ;;  %v260_v29 = vshll.u32 %v220_v9, 8  ;;  %s1686_s6 = scalar_lea.sflag [#allocation4], %s2261_s17  ;;  %s1988_s8 = scalar_lea.vmem %s2721_s22, 1024 }
  0x71   : > { %p1989_p2 = scmp.ne.s32.totalorder %s2721_s22, %s1988_s8  ;;  %s2075_s9 = smov [#allocation8]  }
  0x72   : > { %vm223_vm0 = vcmp.gt.s32.totalorder %v222_v5, 0  ;;  %s1992_s10 = sshll.u32 %s2075_s9, 4  ;;  %s1993_s10 = int_to_ptr.vmem [resolvable:$false] %s1992_s10 }
  0x73   : > { %v224_v7 = vsel %vm223_vm0, %v222_v5, 0  ;;  %vm669_vm0 = vcmask 261120   ;;  %p1990_p1 = pnand %p1989_p2, %p2215_p6  ;;  %s1994_s11 = scalar_lea.vmem %s1993_s10, 2048 }
  0x74   : > { %v226_v8 = vand.u32 31, %v224_v7  ;;  %v225_v10 = vshrl.u32 %v224_v7, 5  ;;  %p1995_p8 = scmp.lt.s32.totalorder %s2721_s22, %s1993_s10  ;;  %p1996_p12 = scmp.lt.s32.totalorder %s1994_s11, %s1988_s8 }
  0x75   : > { %p1991_p4 = pneg %p1990_p1 }
  0x76   : > { %v227_v11 = vsub.s32 32, %v226_v8  ;;  %v229_v13 = vshll.u32 %v2063_v12, %v226_v8  ;;  %v232_v15 = vshll.u32 %v2064_v14, %v226_v8  ;;  %v235_v17 = vshll.u32 %v2065_v16, %v226_v8  ;;  %p1997_p3 = por %p1996_p12, %p1995_p8 }
  0x77   : > { %v238_v19 = vshll.u32 %v2066_v18, %v226_v8  ;;  %v241_v21 = vshll.u32 %v2067_v20, %v226_v8  ;;  %vm244_vm1 = vcmp.lt.s32.totalorder %v225_v10, 1  ;;  %vm247_vm2 = vcmp.lt.s32.totalorder %v225_v10, 4 }
  0x78   : > { %v228_v22 = vshrl.u32 %v2063_v12, %v227_v11  ;;  %v230_v23 = vshrl.u32 %v2064_v14, %v227_v11  ;;  %v233_v24 = vshrl.u32 %v2065_v16, %v227_v11  ;;  %v236_v25 = vshrl.u32 %v2066_v18, %v227_v11  ;;  %p1998_p7 = pnand %p1997_p3, %p1991_p4 }
  0x79   : > { %v239_v26 = vshrl.u32 %v2067_v20, %v227_v11  ;;  %v242_v28 = vshrl.u32 %v2068_v27, %v227_v11  ;;  %vm245_vm3 = vcmp.lt.s32.totalorder %v225_v10, 2  ;;  %vm246_vm4 = vcmp.lt.s32.totalorder %v225_v10, 3 }
  0x7a   : > { %v231_v30 = vor.u32 %v230_v23, %v229_v13  ;;  %v234_v31 = vor.u32 %v233_v24, %v232_v15  ;;  %v237_v32 = vor.u32 %v236_v25, %v235_v17  ;;  %v424_v23 = vlaneseq }
  0x7b   : > { %v240_v33 = vor.u32 %v239_v26, %v238_v19  ;;  %v243_v34 = vor.u32 %v242_v28, %v241_v21  ;;  %v2069_v21 = vmov 1966171168   ;;  %v2070_v26 = vmov 1983009808  }
  0x7c   : > { %v248_v35 = vsel %vm244_vm1, %v228_v22, %v231_v30  ;;  %v249_v36 = vsel %vm247_vm2, %v237_v32, 2102212464  ;;  %v252_v37 = vsel %vm244_vm1, %v231_v30, %v234_v31  ;;  %v256_v38 = vsel %vm244_vm1, %v234_v31, %v237_v32 }
  0x7d   : > { %v250_v39 = vsel %vm246_vm4, %v234_v31, %v249_v36  ;;  %v253_v40 = vsel %vm247_vm2, %v240_v33, 920167782  ;;  %v257_v41 = vsel %vm247_vm2, %v243_v34, 1326507024  ;;  %v422_v22 = vunpack.c.l.s4 %v2069_v21 }
  0x7e   : > { %v254_v42 = vsel %vm246_vm4, %v237_v32, %v253_v40  ;;  %v258_v43 = vsel %vm246_vm4, %v240_v33, %v257_v41  ;;  %v251_v44 = vsel %vm245_vm3, %v248_v35, %v250_v39  ;;  %v512_v27 = vunpack.c.l.s4 %v2070_v26 }
  0x7f   : > { %v255_v45 = vsel %vm245_vm3, %v252_v37, %v254_v42  ;;  %v259_v46 = vsel %vm245_vm3, %v256_v38, %v258_v43  ;;  %v267_v51 = vmul.u32 %v260_v29, %v251_v44  ;;  %v423_v28 = vunpack.c.0.s8 %v422_v22 }
  0x80   : > { %v2279_v47 = vmul.u32.u64.low %v260_v29, %v259_v46  ;;  %v2280_v48 = vmul.u32.u64.high %v260_v29, %v259_v46, %v2279_v47  ;;  %v2282_v49 = vmul.u32.u64.low %v260_v29, %v255_v45  ;;  %v2283_v50 = vmul.u32.u64.high %v260_v29, %v255_v45, %v2282_v49 }
  0x81   : > { %v2293_v29 = vshrl.u32 %v424_v23, 7  ;;  %v2071_v30 = vmov 1934713408   ;;  %v513_v35 = vunpack.c.0.s8 %v512_v27  ;;  %vm671_vm1 = vcmask 523264  }
  0x82   : > { %vm269_vm5 = vc.u32 %v2280_v48, %v2282_v49  ;;  %v270_v52 = vadd.s32 1, %v2283_v50  ;;  %v268_v63 = vadd.s32 %v2282_v49, %v2280_v48  ;;  %v576_v31 = vunpack.c.l.s4 %v2071_v30 }
  0x83   : > { %v2297_v37 = vsub.s32 %v423_v28, %v2293_v29  ;;  %v2300_v45 = vsub.s32 0, %v2293_v29  ;;  %v2303_v46 = vsub.s32 %v513_v35, %v2293_v29  ;;  %vm673_vm2 = vcmask 785408  }
  0x84   : > { %v271_v53 = vsel %vm269_vm5, %v270_v52, %v2283_v50  ;;  %v577_v40 = vunpack.c.0.s8 %v576_v31 }
  0x85   : > { %v272_v54 = vadd.s32 %v271_v53, %v267_v51 }
  0x86   : > { %v2308_v51 = vsub.s32 %v577_v40, %v2293_v29 }
  0x87   : > { %v273_v55 = vadd.s32 536870912, %v272_v54 }
  0x89   : > { %v274_v56 = vshrl.u32 %v273_v55, 30 }
  0x8b   : > { %v275_v57 = vshll.u32 %v274_v56, 30  ;;  %v298_v13 = vsub.s32 4, %v274_v56 }
  0x8d   : > { %v276_v58 = vsub.s32 %v272_v54, %v275_v57  ;;  %v299_v16 = vsel %vm214_vm7, %v298_v13, %v274_v56 }
  0x8e   : > { %v301_v19 = vsel %vm213_vm8, 0, %v299_v16 }
  0x8f   : > { %v278_v59 = vsub.s32 0, %v276_v58  ;;  %v408_v20 = vadd.s32 3, %v301_v19  ;;  %v305_v25 = vand.u32 3, %v301_v19 }
  0x91   : > { %v1802_v60 = vmin.u32 %v278_v59, %v276_v58  ;;  %v409_v24 = vand.u32 3, %v408_v20  ;;  %vm310_vm10 = vcmp.eq.s32.totalorder %v305_v25, 2  ;;  %vm307_vm12 = vcmp.eq.s32.totalorder %v305_v25, 0 }
  0x92   : > { %vm306_vm14 = vcmp.lt.s32.totalorder %v305_v25, 2 }
  0x93   : > { %v280_v61 = vclz %v1802_v60  ;;  %vm414_vm9 = vcmp.eq.s32.totalorder %v409_v24, 2  ;;  %vm411_vm11 = vcmp.eq.s32.totalorder %v409_v24, 0  ;;  %vm410_vm13 = vcmp.lt.s32.totalorder %v409_v24, 2 }
  0x95   : > { %v1803_v62 = vadd.s32 4294967294, %v280_v61 }
  0x97   : > { %vm1804_vm6 = vcmp.lt.s32.totalorder %v1803_v62, 0 }
  0x98   : > { %v283_v1 = vsel %vm1804_vm6, 0, %v1803_v62 }
  0x99   : > { %v284_v2 = vsub.s32 32, %v283_v1  ;;  %v285_v4 = vshll.u32 %v276_v58, %v283_v1  ;;  %v288_v5 = vsub.s32 4294967266, %v283_v1 }
  0x9b   : > { %v286_v6 = vshrl.u32 %v268_v63, %v284_v2  ;;  %v289_v7 = vadd.s32 127, %v288_v5 }
  0x9d   : > { %v287_v8 = vor.u32 %v286_v6, %v285_v4  ;;  %v290_v9 = vshll.u32 %v289_v7, 23 }
  0x9f   : > { %v291_v10 = vor.u32 4788187, %v290_v9  ;;  %v294_v11 = vcvt.s32.f32 %v287_v8 }
  0xa1   : > { %v292_v12 = vand.u32 2147483647, %v291_v10 }
  0xa3   : > { %v295_v14 = vmul.f32 %v294_v11, %v292_v12 }
  0xa5   : > { %v296_v15 = vxor.u32 2147483648, %v295_v14 }
  0xa7   : > { %v297_v17 = vsel %vm214_vm7, %v296_v15, %v295_v14 }
  0xa8   : > { %v300_v18 = vsel %vm213_vm8, %v2273_v0, %v297_v17 }
  0xa9   : > { %1898 = vcosq.f32 %v300_v18 }
  0xaa   : > { %1900 = vsinq.f32 %v300_v18 }
  0xb3   : > { %v1899_v3 = vpop.eup %1898 }
  0xb4   : > { %v1901_v32 = vpop.eup %1900  ;;  %v311_v33 = vxor.u32 2147483648, %v1899_v3 }
  0xb5   : > { %v308_v34 = vxor.u32 2147483648, %v1901_v32 }
  0xb6   : > { %v416_v36 = vsel %vm414_vm9, %v311_v33, %v1901_v32  ;;  %v312_v38 = vsel %vm310_vm10, %v311_v33, %v1901_v32 }
  0xb7   : > { %v413_v39 = vsel %vm411_vm11, %v1899_v3, %v308_v34  ;;  %v309_v41 = vsel %vm307_vm12, %v1899_v3, %v308_v34 }
  0xb8   : > { %v417_v42 = vsel %vm410_vm13, %v413_v39, %v416_v36  ;;  %v313_v43 = vsel %vm306_vm14, %v309_v41, %v312_v38 }
  0xb9   : > { %v418_v44 = vsel %vm304_vm15, nan, %v417_v42  ;;  %v314_v47 = vsel %vm304_vm15, nan, %v313_v43 }
  0xba   : > { %v729_v48 = vcombine.high %v418_v44, %v418_v44  ;;  %v736_v0 = vrot.slane %v418_v44, %v2297_v37  ;;  %v420_v49 = vcombine.high %v314_v47, %v314_v47  ;;  %v427_v50 = vrot.slane %v314_v47, %v2297_v37 }
  0xbb   : > { %v1042_v52 = vmul.f32 %v314_v47, %v314_v47  ;;  %v1043_v53 = vmul.f32 %v418_v44, %v418_v44  ;;  %v1045_v54 = vmul.f32 %v418_v44, %v314_v47 }
  0xbc   : > { %v743_v55 = vrot.slane %v729_v48, %v2297_v37  ;;  %v744_v56 = vcombine.high %v736_v0, %v736_v0  ;;  %v752_v57 = vrot.slane %v736_v0, %v2297_v37  ;;  %v434_v58 = vrot.slane %v420_v49, %v2297_v37 }
  0xbd   : > { %v435_v59 = vcombine.high %v427_v50, %v427_v50  ;;  %v443_v60 = vrot.slane %v427_v50, %v2297_v37  ;;  %v2314_v61 = vsub.f32 %v1042_v52, %v1043_v53  ;;  %v2316_v62 = vadd.f32 %v1045_v54, %v1045_v54 }
  0xbe   : > { %v745_v63 = vcombine.high %v743_v55, %v743_v55  ;;  %v759_v1 = vrot.slane %v743_v55, %v2297_v37  ;;  %v766_v2 = vrot.slane %v744_v56, %v2297_v37  ;;  %v774_v4 = vcombine.high %v752_v57, %v752_v57 }
  0xbf   : > { %v781_v5 = vrot.slane %v752_v57, %v2300_v45  ;;  %v436_v6 = vcombine.high %v434_v58, %v434_v58  ;;  %v450_v7 = vrot.slane %v434_v58, %v2297_v37  ;;  %v457_v8 = vrot.slane %v435_v59, %v2297_v37 }
  0xc0   : > { %v773_v9 = vrot.slane %v745_v63, %v2297_v37  ;;  %v775_v10 = vcombine.high %v759_v1, %v759_v1  ;;  %v776_v11 = vcombine.high %v766_v2, %v766_v2  ;;  %v785_v12 = vrot.slane %v766_v2, %v2300_v45 }
  0xc1   : > { %v789_v13 = vrot.slane %v774_v4, %v2300_v45  ;;  %v797_v14 = vrot.slane %v759_v1, %v2300_v45  ;;  %v464_v15 = vrot.slane %v436_v6, %v2297_v37  ;;  %v465_v16 = vcombine.high %v443_v60, %v443_v60 }
  0xc2   : > { %v777_v17 = vcombine.high %v773_v9, %v773_v9  ;;  %v793_v18 = vrot.slane %v776_v11, %v2300_v45  ;;  %v801_v19 = vrot.slane %v773_v9, %v2300_v45  ;;  %v805_v20 = vrot.slane %v775_v10, %v2300_v45 }
  0xc3   : > { %v818_v21 = vcombine.low %v781_v5, %v789_v13  ;;  %v466_v22 = vcombine.high %v450_v7, %v450_v7  ;;  %v467_v23 = vcombine.high %v457_v8, %v457_v8  ;;  %v468_v24 = vcombine.high %v464_v15, %v464_v15 }
  0xc4   : > { %v809_v25 = vrot.slane %v777_v17, %v2300_v45  ;;  %v834_v26 = vcombine.low %v785_v12, %v793_v18  ;;  %v850_v27 = vcombine.low %v797_v14, %v805_v20  ;;  %v472_v28 = vrot.slane %v443_v60, %v2300_v45 }
  0xc5   : > { %v2334_v3 = vrot.slane %v818_v21, %v2303_v46  ;;  %v476_v30 = vrot.slane %v457_v8, %v2300_v45  ;;  %v480_v31 = vrot.slane %v465_v16, %v2300_v45  ;;  %v484_v32 = vrot.slane %v467_v23, %v2300_v45 }
  0xc6   : > { %v2340_v33 = vrot.slane %v834_v26, %v2303_v46  ;;  %v2343_v34 = vrot.slane %v850_v27, %v2303_v46  ;;  %v866_v35 = vcombine.low %v801_v19, %v809_v25  ;;  %v488_v36 = vrot.slane %v450_v7, %v2300_v45 }
  0xc7   : > { %v492_v38 = vrot.slane %v464_v15, %v2300_v45  ;;  %v496_v39 = vrot.slane %v466_v22, %v2300_v45  ;;  %v500_v40 = vrot.slane %v468_v24, %v2300_v45  ;;  %v509_v41 = vcombine.low %v472_v28, %v480_v31 }
  0xc8   : > { %v2350_v42 = vrot.slane %v866_v35, %v2303_v46  ;;  %v882_v43 = vcombine.low %v2334_v3, %v2340_v33  ;;  %v525_v44 = vcombine.low %v476_v30, %v484_v32  ;;  %v819_v47 = vcombine.high %v781_v5, %v789_v13 }
  0xc9   : > { %v517_v48 = vrot.slane %v509_v41, %v2303_v46  ;;  %v541_v0 = vcombine.low %v488_v36, %v496_v39  ;;  %v557_v49 = vcombine.low %v492_v38, %v500_v40  ;;  %v835_v50 = vcombine.high %v785_v12, %v793_v18 }
  0xca   : > { %v2356_v52 = vrot.slane %v882_v43, %v2308_v51  ;;  %v914_v53 = vcombine.low %v2343_v34, %v2350_v42  ;;  %v533_v54 = vrot.slane %v525_v44, %v2303_v46  ;;  %v833_v55 = vrot.slane %v819_v47, %v2303_v46 }
  0xcb   : > { %v549_v56 = vrot.slane %v541_v0, %v2303_v46  ;;  %v565_v57 = vrot.slane %v557_v49, %v2303_v46  ;;  %v849_v58 = vrot.slane %v835_v50, %v2303_v46  ;;  %v851_v59 = vcombine.high %v797_v14, %v805_v20 }
  0xcc   : > { %v2366_v60 = vrot.slane %v914_v53, %v2308_v51  ;;  %v573_v63 = vcombine.low %v517_v48, %v533_v54  ;;  %v867_v1 = vcombine.high %v801_v19, %v809_v25  ;;  %v510_v2 = vcombine.high %v472_v28, %v480_v31 }
  0xcd   : > { %v605_v4 = vcombine.low %v549_v56, %v565_v57  ;;  %v865_v5 = vrot.slane %v851_v59, %v2303_v46  ;;  %v898_v6 = vcombine.low %v833_v55, %v849_v58  ;;  %v526_v7 = vcombine.high %v476_v30, %v484_v32 }
  0xce   : > { %v947_v8 = vcombine.high %v2356_v52, %v2366_v60  ;;  %v946_v9 = vcombine.low %v2356_v52, %v2366_v60  ;;  %v2374_v10 = vrot.slane %v573_v63, %v2308_v51  ;;  %v881_v11 = vrot.slane %v867_v1, %v2303_v46 }
  0xcf   : > { %v2378_v12 = vrot.slane %v605_v4, %v2308_v51  ;;  %v2381_v13 = vrot.slane %v898_v6, %v2308_v51  ;;  %v524_v14 = vrot.slane %v510_v2, %v2303_v46  ;;  %v540_v15 = vrot.slane %v526_v7, %v2303_v46 }
  0xd0   : > { %955 = vrot.lane.b32.xlu1 %v947_v8, %s2072_s18  ;;  %v930_v16 = vcombine.low %v865_v5, %v881_v11  ;;  %v542_v17 = vcombine.high %v488_v36, %v496_v39  ;;  %v558_v18 = vcombine.high %v492_v38, %v500_v40  ;;  %v574_v19 = vcombine.high %v517_v48, %v533_v54 }
  0xd1   : > { %v638_v20 = vcombine.high %v2374_v10, %v2378_v12  ;;  %v637_v21 = vcombine.low %v2374_v10, %v2378_v12  ;;  %v589_v22 = vcombine.low %v524_v14, %v540_v15  ;;  %v590_v23 = vcombine.high %v524_v14, %v540_v15 }
  0xd2   : > { %v2391_v24 = vrot.slane %v930_v16, %v2308_v51  ;;  %v556_v25 = vrot.slane %v542_v17, %v2303_v46  ;;  %v572_v26 = vrot.slane %v558_v18, %v2303_v46  ;;  %v2396_v27 = vrot.slane %v574_v19, %v2308_v51 }
  0xd3   : > { %646 = vrot.lane.b32.xlu0 %v638_v20, %s2072_s18  ;;  %v2400_v28 = vrot.slane %v589_v22, %v2308_v51  ;;  %v2403_v30 = vrot.slane %v590_v23, %v2308_v51  ;;  %v606_v31 = vcombine.high %v549_v56, %v565_v57  ;;  %v899_v32 = vcombine.high %v833_v55, %v849_v58 }
  0xd4   : > { %v951_v35 = vcombine.high %v2381_v13, %v2391_v24  ;;  %v621_v36 = vcombine.low %v556_v25, %v572_v26  ;;  %v622_v38 = vcombine.high %v556_v25, %v572_v26  ;;  %v931_v39 = vcombine.high %v865_v5, %v881_v11 }
  0xd5   : > { %v2408_v40 = vrot.slane %v606_v31, %v2308_v51  ;;  %v2411_v41 = vrot.slane %v899_v32, %v2308_v51  ;;  %v883_v43 = vcombine.high %v2334_v3, %v2340_v33  ;;  %v915_v44 = vcombine.high %v2343_v34, %v2350_v42 }
  0xd6   : > { %967 = vrot.lane.b32.xlu1 %v951_v35, %s2072_s18  ;;  %v2419_v47 = vrot.slane %v621_v36, %v2308_v51  ;;  %v636_v48 = vrot.slane %v622_v38, %v2308_v51  ;;  %v2423_v0 = vrot.slane %v931_v39, %v2308_v51  ;;  %v1048_v49 = vcombine.high %v2314_v61, %v2314_v61 }
  0xd7   : > { %v639_v50 = vcombine.low %v2396_v27, %v2408_v40  ;;  %v2430_v3 = vrot.slane %v883_v43, %v2308_v51  ;;  %v2433_v33 = vrot.slane %v915_v44, %v2308_v51  ;;  %v640_v34 = vcombine.high %v2396_v27, %v2408_v40 }
  0xd8   : > { %v642_v42 = vcombine.high %v2400_v28, %v2419_v47  ;;  %v643_v53 = vcombine.low %v2403_v30, %v636_v48  ;;  %v952_v54 = vcombine.low %v2411_v41, %v2423_v0  ;;  %v644_v55 = vcombine.high %v2403_v30, %v636_v48 }
  0xd9   : > { %v948_v56 = vcombine.low %v2430_v3, %v2433_v33  ;;  %v953_v57 = vcombine.high %v2411_v41, %v2423_v0  ;;  %v949_v58 = vcombine.high %v2430_v3, %v2433_v33  ;;  %v1055_v59 = vrot.slane %v2314_v61, %v2297_v37 }
  0xda   : > { %658 = vrot.lane.b32.xlu0 %v642_v42, %s2072_s18  ;;  %662 = vrot.lane.b32.xlu1 %v643_v53, %s2073_s20  ;;  %v1062_v63 = vrot.slane %v1048_v49, %v2297_v37  ;;  %v1355_v1 = vcombine.high %v2316_v62, %v2316_v62  ;;  %v1362_v2 = vrot.slane %v2316_v62, %v2297_v37 }
  0xdb   : > { %v1063_v4 = vcombine.high %v1055_v59, %v1055_v59  ;;  %v1071_v5 = vrot.slane %v1055_v59, %v2297_v37  ;;  %v950_v6 = vcombine.low %v2381_v13, %v2391_v24  ;;  %v641_v61 = vcombine.low %v2400_v28, %v2419_v47 }
  0xdc   : > { %v1064_v7 = vcombine.high %v1062_v63, %v1062_v63  ;;  %v1078_v8 = vrot.slane %v1062_v63, %v2297_v37  ;;  %v1369_v11 = vrot.slane %v1355_v1, %v2297_v37  ;;  %v1370_v14 = vcombine.high %v1362_v2, %v1362_v2 }
  0xdd   : > { %v1085_v15 = vrot.slane %v1063_v4, %v2297_v37  ;;  %v1093_v16 = vcombine.high %v1071_v5, %v1071_v5  ;;  %v1100_v62 = vrot.slane %v1071_v5, %v2300_v45  ;;  %v1378_v17 = vrot.slane %v1362_v2, %v2297_v37 }
  0xde   : > { %650 = vrot.lane.b32.xlu0 %v639_v50, %s2073_s20  ;;  %971 = vrot.lane.b32.xlu1 %v952_v54, %s2073_s20  ;;  %v1092_v18 = vrot.slane %v1064_v7, %v2297_v37  ;;  %v1094_v19 = vcombine.high %v1078_v8, %v1078_v8  ;;  %v1116_v20 = vrot.slane %v1078_v8, %v2300_v45 }
  0xdf   : > { %v1095_v22 = vcombine.high %v1085_v15, %v1085_v15  ;;  %v1104_v23 = vrot.slane %v1085_v15, %v2300_v45  ;;  %v1108_v25 = vrot.slane %v1093_v16, %v2300_v45  ;;  %v1371_v26 = vcombine.high %v1369_v11, %v1369_v11 }
  0xe0   : > { %v1096_v27 = vcombine.high %v1092_v18, %v1092_v18  ;;  %v1120_v30 = vrot.slane %v1092_v18, %v2300_v45  ;;  %v1124_v31 = vrot.slane %v1094_v19, %v2300_v45  ;;  %v1385_v32 = vrot.slane %v1369_v11, %v2297_v37 }
  0xe1   : > { %v1112_v35 = vrot.slane %v1095_v22, %v2300_v45  ;;  %v1138_v36 = vcombine.high %v1100_v62, %v1108_v25  ;;  %v1137_v38 = vcombine.low %v1100_v62, %v1108_v25  ;;  %v1392_v39 = vrot.slane %v1370_v14, %v2297_v37 }
  0xe2   : > { %959 = vrot.lane.b32.xlu0 %v948_v56, %s2073_s20  ;;  %666 = vrot.lane.b32.xlu1 %v644_v55, %s2074_s24  ;;  %v1128_v40 = vrot.slane %v1096_v27, %v2300_v45  ;;  %v1170_v41 = vcombine.high %v1116_v20, %v1124_v31  ;;  %v1169_v43 = vcombine.low %v1116_v20, %v1124_v31 }
  0xe3   : > { %v2483_v44 = vrot.slane %v1138_v36, %v2303_v46  ;;  %v1154_v48 = vcombine.high %v1104_v23, %v1112_v35  ;;  %v2486_v0 = vrot.slane %v1137_v38, %v2303_v46  ;;  %v1153_v49 = vcombine.low %v1104_v23, %v1112_v35 }
  0xe4   : > { %v2489_v50 = vrot.slane %v1170_v41, %v2303_v46  ;;  %v1186_v42 = vcombine.high %v1120_v30, %v1128_v40  ;;  %v2492_v53 = vrot.slane %v1169_v43, %v2303_v46  ;;  %v1185_v54 = vcombine.low %v1120_v30, %v1128_v40 }
  0xe5   : > { %v1168_v55 = vrot.slane %v1154_v48, %v2303_v46  ;;  %v1161_v56 = vrot.slane %v1153_v49, %v2303_v46  ;;  %v1399_v59 = vrot.slane %v1371_v26, %v2297_v37  ;;  %v1400_v63 = vcombine.high %v1378_v17, %v1378_v17 }
  0xe6   : > { %654 = vrot.lane.b32.xlu0 %v640_v34, %s2074_s24  ;;  %975 = vrot.lane.b32.xlu1 %v953_v57, %s2074_s24  ;;  %v1200_v1 = vrot.slane %v1186_v42, %v2303_v46  ;;  %v1193_v2 = vrot.slane %v1185_v54, %v2303_v46  ;;  %v1401_v4 = vcombine.high %v1385_v32, %v1385_v32 }
  0xe7   : > { %v1217_v5 = vcombine.low %v2483_v44, %v1168_v55  ;;  %v1201_v7 = vcombine.low %v2486_v0, %v1161_v56  ;;  %v1402_v8 = vcombine.high %v1392_v39, %v1392_v39  ;;  %v1403_v11 = vcombine.high %v1399_v59, %v1399_v59 }
  0xe8   : > { %v1249_v14 = vcombine.low %v2489_v50, %v1200_v1  ;;  %v1233_v37 = vcombine.low %v2492_v53, %v1193_v2  ;;  %v1407_v15 = vrot.slane %v1378_v17, %v2300_v45  ;;  %v1411_v34 = vrot.slane %v1392_v39, %v2300_v45 }
  0xe9   : > { %v2508_v57 = vrot.slane %v1217_v5, %v2308_v51  ;;  %v2511_v16 = vrot.slane %v1201_v7, %v2308_v51  ;;  %v1415_v62 = vrot.slane %v1400_v63, %v2300_v45  ;;  %v1419_v18 = vrot.slane %v1402_v8, %v2300_v45 }
  0xea   : > { %963 = vrot.lane.b32.xlu0 %v949_v58, %s2074_s24  ;;  %v2520_v19 = vrot.slane %v1249_v14, %v2308_v51  ;;  %v2523_v17 = vrot.slane %v1233_v37, %v2308_v51  ;;  %v1423_v20 = vrot.slane %v1385_v32, %v2300_v45  ;;  %v1427_v22 = vrot.slane %v1399_v59, %v2300_v45 }
  0xeb   : > { %v1431_v23 = vrot.slane %v1401_v4, %v2300_v45  ;;  %v1435_v25 = vrot.slane %v1403_v11, %v2300_v45  ;;  %v1445_v26 = vcombine.high %v1407_v15, %v1415_v62  ;;  %v1461_v27 = vcombine.high %v1411_v34, %v1419_v18 }
  0xec   : > { %v1270_v3 = vcombine.high %v2508_v57, %v2520_v19  ;;  %v1266_v33 = vcombine.high %v2511_v16, %v2523_v17  ;;  %v1444_v58 = vcombine.low %v1407_v15, %v1415_v62  ;;  %v1460_v30 = vcombine.low %v1411_v34, %v1419_v18 }
  0xed   : > { %v1459_v31 = vrot.slane %v1445_v26, %v2303_v46  ;;  %v1475_v32 = vrot.slane %v1461_v27, %v2303_v46  ;;  %v1477_v35 = vcombine.high %v1423_v20, %v1431_v23  ;;  %v1493_v36 = vcombine.high %v1427_v22, %v1435_v25 }
  0xee   : > { %1286 = vrot.lane.b32.xlu1 %v1270_v3, %s2072_s18  ;;  %1274 = vrot.lane.b32.xlu0 %v1266_v33, %s2072_s18  ;;  %v1452_v38 = vrot.slane %v1444_v58, %v2303_v46  ;;  %v1468_v39 = vrot.slane %v1460_v30, %v2303_v46  ;;  %v1476_v40 = vcombine.low %v1423_v20, %v1431_v23 }
  0xef   : > { %v1491_v41 = vrot.slane %v1477_v35, %v2303_v46  ;;  %v1507_v43 = vrot.slane %v1493_v36, %v2303_v46  ;;  %v1524_v48 = vcombine.low %v1459_v31, %v1475_v32  ;;  %v1492_v49 = vcombine.low %v1427_v22, %v1435_v25 }
  0xf0   : > { %v1484_v42 = vrot.slane %v1476_v40, %v2303_v46  ;;  %v1508_v54 = vcombine.low %v1452_v38, %v1468_v39  ;;  %v1218_v59 = vcombine.high %v2483_v44, %v1168_v55  ;;  %v1250_v63 = vcombine.high %v2489_v50, %v1200_v1 }
  0xf1   : > { %v2545_v4 = vrot.slane %v1524_v48, %v2308_v51  ;;  %v1556_v5 = vcombine.low %v1491_v41, %v1507_v43  ;;  %v1500_v7 = vrot.slane %v1492_v49, %v2303_v46  ;;  %v1202_v8 = vcombine.high %v2486_v0, %v1161_v56 }
  0xf2   : > { %v2550_v11 = vrot.slane %v1508_v54, %v2308_v51  ;;  %v1232_v14 = vrot.slane %v1218_v59, %v2308_v51  ;;  %v1234_v37 = vcombine.high %v2492_v53, %v1193_v2  ;;  %v1264_v50 = vrot.slane %v1250_v63, %v2308_v51  ;;  %v678_v59 = vld [vmem:[#allocation5] ss:$2 sm:$0xff] }
  0xf3   : > { %v2555_v15 = vrot.slane %v1556_v5, %v2308_v51  ;;  %v1540_v44 = vcombine.low %v1484_v42, %v1500_v7  ;;  %v1525_v55 = vcombine.high %v1459_v31, %v1475_v32  ;;  %v1216_v1 = vrot.slane %v1202_v8, %v2308_v51 }
  0xf4   : > { %v1248_v46 = vrot.slane %v1234_v37, %v2308_v51  ;;  %v1557_v34 = vcombine.high %v1491_v41, %v1507_v43  ;;  %v1509_v62 = vcombine.high %v1452_v38, %v1468_v39  ;;  %v1541_v53 = vcombine.high %v1484_v42, %v1500_v7  ;;  %v984_v7 = vld [vmem:[#allocation7] ss:$2 sm:$0xff] }
  0xf5   : > { %v1577_v0 = vcombine.high %v2545_v4, %v2555_v15  ;;  %v2563_v56 = vrot.slane %v1540_v44, %v2308_v51  ;;  %v1271_v18 = vcombine.low %v1232_v14, %v1264_v50  ;;  %v1539_v20 = vrot.slane %v1525_v55, %v2308_v51 }
  0xf6   : > { %v1571_v22 = vrot.slane %v1557_v34, %v2308_v51  ;;  %v1267_v23 = vcombine.low %v1216_v1, %v1248_v46  ;;  %v1523_v25 = vrot.slane %v1509_v62, %v2308_v51  ;;  %v1555_v26 = vrot.slane %v1541_v53, %v2308_v51 }
  0xf7   : > { %1593 = vrot.lane.b32.xlu1 %v1577_v0, %s2072_s18  ;;  %v1573_v2 = vcombine.high %v2550_v11, %v2563_v56  ;;  %v1269_v33 = vcombine.low %v2508_v57, %v2520_v19  ;;  %v1265_v58 = vcombine.low %v2511_v16, %v2523_v17  ;;  %v1576_v30 = vcombine.low %v2545_v4, %v2555_v15 }
  0xf8   : > { %v1578_v27 = vcombine.low %v1539_v20, %v1571_v22  ;;  %v1574_v3 = vcombine.low %v1523_v25, %v1555_v26  ;;  %v1572_v31 = vcombine.low %v2550_v11, %v2563_v56  ;;  %v1272_v51 = vcombine.high %v1232_v14, %v1264_v50 }
  0xf9   : > { %1581 = vrot.lane.b32.xlu0 %v1573_v2, %s2072_s18  ;;  %v1268_v32 = vcombine.high %v1216_v1, %v1248_v46  ;;  %v1579_v35 = vcombine.high %v1539_v20, %v1571_v22  ;;  %v1575_v36 = vcombine.high %v1523_v25, %v1555_v26  ;;  %v2590_v48 = vsub.s32 1, %v2293_v29 }
  0xfa   : > { %v2593_v49 = vsub.s32 3, %v2293_v29  ;;  %v2596_v63 = vsub.s32 5, %v2293_v29  ;;  %v2599_v5 = vsub.s32 7, %v2293_v29  ;;  %v2602_v8 = vsub.s32 2, %v2293_v29 }
  0xfb   : > { %1290 = vrot.lane.b32.xlu1 %v1271_v18, %s2073_s20  ;;  %v2605_v14 = vsub.s32 4, %v2293_v29  ;;  %v2608_v37 = vsub.s32 6, %v2293_v29  ;;  %v687_v44 = vrot.slane %v678_v59, %v2590_v48  ;;  %v683_v0 = vrot.slane %v678_v59, %v2300_v45 }
  0xfc   : > { %v695_v50 = vrot.slane %v678_v59, %v2593_v49  ;;  %v703_v1 = vrot.slane %v678_v59, %v2596_v63  ;;  %v711_v46 = vrot.slane %v678_v59, %v2599_v5  ;;  %v993_v62 = vrot.slane %v984_v7, %v2590_v48 }
  0xfd   : > { %1278 = vrot.lane.b32.xlu0 %v1267_v23, %s2073_s20  ;;  %v1001_v53 = vrot.slane %v984_v7, %v2593_v49  ;;  %v1009_v2 = vrot.slane %v984_v7, %v2596_v63  ;;  %v1017_v18 = vrot.slane %v984_v7, %v2599_v5  ;;  %v691_v22 = vrot.slane %v678_v59, %v2602_v8 }
  0xfe   : > { %v699_v23 = vrot.slane %v678_v59, %v2605_v14  ;;  %v707_v25 = vrot.slane %v678_v59, %v2608_v37  ;;  %v989_v26 = vrot.slane %v984_v7, %v2300_v45  ;;  %v1005_v10 = vrot.slane %v984_v7, %v2605_v14 }
  0xff   : > { %1597 = vrot.lane.b32.xlu1 %v1578_v27, %s2073_s20  ;;  %v1013_v24 = vrot.slane %v984_v7, %v2608_v37 }
 0x101   : > { %1585 = vrot.lane.b32.xlu0 %v1574_v3, %s2073_s20 }
 0x103   : > { %1294 = vrot.lane.b32.xlu1 %v1272_v51, %s2074_s24 }
 0x105   : > { %1282 = vrot.lane.b32.xlu0 %v1268_v32, %s2074_s24 }
 0x107   : > { %1601 = vrot.lane.b32.xlu1 %v1579_v35, %s2074_s24  ;;  %v997_v35 = vrot.slane %v984_v7, %v2602_v8 }
 0x109   : > { %1589 = vrot.lane.b32.xlu0 %v1575_v36, %s2074_s24 }
 0x142   : > { %v956_v38 = vpop.permute.xlu1 %955 }
 0x143   : > { %v978_v12 = vsel %vm669_vm0, %v946_v9, %v956_v38 }
 0x145   : > { %v647_v39 = vpop.permute.xlu0 %646 }
 0x146   : > { %v670_v28 = vsel %vm669_vm0, %v637_v21, %v647_v39 }
 0x148   : > { %v968_v40 = vpop.permute.xlu1 %967 }
 0x149   : > { %v981_v47 = vsel %vm669_vm0, %v950_v6, %v968_v40 }
 0x14c   : > { %v659_v41 = vpop.permute.xlu0 %658  ;;  %v663_v43 = vpop.permute.xlu1 %662 }
 0x14d   : > { %v675_v29 = vsel %vm669_vm0, %v641_v61, %v659_v41 }
 0x14e   : > { %v676_v20 = vsel %vm671_vm1, %v675_v29, %v663_v43 }
 0x150   : > { %v651_v42 = vpop.permute.xlu0 %650  ;;  %v972_v54 = vpop.permute.xlu1 %971 }
 0x151   : > { %v672_v27 = vsel %vm671_vm1, %v670_v28, %v651_v42  ;;  %v982_v3 = vsel %vm671_vm1, %v981_v47, %v972_v54 }
 0x154   : > { %v960_v55 = vpop.permute.xlu0 %959  ;;  %v667_v34 = vpop.permute.xlu1 %666 }
 0x155   : > { %v677_v61 = vsel %vm673_vm2, %v676_v20, %v667_v34  ;;  %v979_v59 = vsel %vm671_vm1, %v978_v12, %v960_v55 }
 0x156   : > { %v721_v6 = vmul.f32 %v687_v44, %v677_v61  ;;  %v723_v36 = vmul.f32 %v695_v50, %v677_v61  ;;  %v725_v39 = vmul.f32 %v703_v1, %v677_v61  ;;  %v727_v40 = vmul.f32 %v711_v46, %v677_v61 }
 0x158   : > { %v655_v51 = vpop.permute.xlu0 %654  ;;  %v976_v32 = vpop.permute.xlu1 %975 }
 0x159   : > { %v674_v13 = vsel %vm673_vm2, %v672_v27, %v655_v51  ;;  %v983_v21 = vsel %vm673_vm2, %v982_v3, %v976_v32  ;;  %v1304_v27 = vld [vmem:[#allocation5 + $0x1] ss:$2 sm:$0xff] }
 0x15a   : > { %v1027_v41 = vmul.f32 %v993_v62, %v983_v21  ;;  %v1029_v43 = vmul.f32 %v1001_v53, %v983_v21  ;;  %v1031_v42 = vmul.f32 %v1009_v2, %v983_v21  ;;  %v1033_v54 = vmul.f32 %v1017_v18, %v983_v21 }
 0x15b   : > { %v720_v34 = vmul.f32 %v683_v0, %v674_v13  ;;  %v722_v7 = vmul.f32 %v691_v22, %v674_v13  ;;  %v724_v44 = vmul.f32 %v699_v23, %v674_v13  ;;  %v726_v50 = vmul.f32 %v707_v25, %v674_v13 }
 0x15c   : > { %v964_v52 = vpop.permute.xlu0 %963  ;;  %v2649_v60 = vadd.f32 %v1027_v41, %v721_v6  ;;  %v2651_v9 = vadd.f32 %v1029_v43, %v723_v36  ;;  %v2653_v38 = vadd.f32 %v1031_v42, %v725_v39  ;;  %v2655_v29 = vadd.f32 %v1033_v54, %v727_v40 }
 0x15d   : > { %v980_v1 = vsel %vm673_vm2, %v979_v59, %v964_v52  ;;  %v1313_v32 = vrot.slane %v1304_v27, %v2590_v48  ;;  %v1337_v12 = vrot.slane %v1304_v27, %v2599_v5  ;;  %v1309_v21 = vrot.slane %v1304_v27, %v2300_v45 }
 0x15e   : > { %v1026_v46 = vmul.f32 %v989_v26, %v980_v1  ;;  %v1028_v62 = vmul.f32 %v997_v35, %v980_v1  ;;  %v1030_v53 = vmul.f32 %v1005_v10, %v980_v1  ;;  %v1032_v2 = vmul.f32 %v1013_v24, %v980_v1  ;;  %v1611_v26 = vld [vmem:[#allocation7 + $0x1] ss:$2 sm:$0xff] }
 0x15f   : > { %v1321_v35 = vrot.slane %v1304_v27, %v2593_v49  ;;  %v1329_v10 = vrot.slane %v1304_v27, %v2596_v63  ;;  %v1317_v24 = vrot.slane %v1304_v27, %v2602_v8  ;;  %v1325_v6 = vrot.slane %v1304_v27, %v2605_v14 }
 0x160   : > { %v2658_v55 = vadd.f32 %v1026_v46, %v720_v34  ;;  %v2660_v0 = vadd.f32 %v1028_v62, %v722_v7  ;;  %v2662_v18 = vadd.f32 %v1030_v53, %v724_v44  ;;  %v2664_v20 = vadd.f32 %v1032_v2, %v726_v50  ;;  %v1287_v28 = vpop.permute.xlu1 %1286  ;;  %v1275_v47 = vpop.permute.xlu0 %1274 }
 0x161   : > { %v1300_v13 = vsel %vm669_vm0, %v1269_v33, %v1287_v28  ;;  %v1333_v40 = vrot.slane %v1304_v27, %v2608_v37  ;;  %v1620_v41 = vrot.slane %v1611_v26, %v2590_v48  ;;  %v1628_v43 = vrot.slane %v1611_v26, %v2593_v49 }
 0x162   : > { %v1297_v57 = vsel %vm669_vm0, %v1265_v58, %v1275_v47  ;;  %v1636_v33 = vrot.slane %v1611_v26, %v2596_v63  ;;  %v1644_v42 = vrot.slane %v1611_v26, %v2599_v5  ;;  %v1616_v34 = vrot.slane %v1611_v26, %v2300_v45 }
 0x163   : > { %v1624_v48 = vrot.slane %v1611_v26, %v2602_v8  ;;  %v1632_v49 = vrot.slane %v1611_v26, %v2605_v14  ;;  %v1640_v63 = vrot.slane %v1611_v26, %v2608_v37 }
 0x169   : > { %v1594_v61 = vpop.permute.xlu1 %1593 }
 0x16a   : > { %v1607_v16 = vsel %vm669_vm0, %v1576_v30, %v1594_v61 }
 0x16b   : > { %v1582_v22 = vpop.permute.xlu0 %1581 }
 0x16c   : > { %v1604_v17 = vsel %vm669_vm0, %v1572_v31, %v1582_v22 }
 0x16d   : > { %v1291_v23 = vpop.permute.xlu1 %1290 }
 0x16e   : > { %v1301_v36 = vsel %vm671_vm1, %v1300_v13, %v1291_v23 }
 0x16f   : > { %v1279_v25 = vpop.permute.xlu0 %1278 }
 0x170   : > { %v1298_v54 = vsel %vm671_vm1, %v1297_v57, %v1279_v25 }
 0x171   : > { %v1598_v3 = vpop.permute.xlu1 %1597 }
 0x172   : > { %v1608_v45 = vsel %vm671_vm1, %v1607_v16, %v1598_v3 }
 0x173   : > { %v1586_v51 = vpop.permute.xlu0 %1585 }
 0x174   : > { %v1605_v5 = vsel %vm671_vm1, %v1604_v17, %v1586_v51 }
 0x175   : > { %v1295_v39 = vpop.permute.xlu1 %1294 }
 0x176   : > { %v1302_v19 = vsel %vm673_vm2, %v1301_v36, %v1295_v39 }
 0x177   : > { %v1283_v59 = vpop.permute.xlu0 %1282  ;;  %v1347_v8 = vmul.f32 %v1313_v32, %v1302_v19  ;;  %v1349_v14 = vmul.f32 %v1321_v35, %v1302_v19  ;;  %v1351_v4 = vmul.f32 %v1329_v10, %v1302_v19  ;;  %v1353_v15 = vmul.f32 %v1337_v12, %v1302_v19 }
 0x178   : > { %v1299_v58 = vsel %vm673_vm2, %v1298_v54, %v1283_v59 }
 0x179   : > { %v1602_v52 = vpop.permute.xlu1 %1601  ;;  %v1346_v30 = vmul.f32 %v1309_v21, %v1299_v58  ;;  %v1348_v1 = vmul.f32 %v1317_v24, %v1299_v58  ;;  %v1350_v37 = vmul.f32 %v1325_v6, %v1299_v58  ;;  %v1352_v46 = vmul.f32 %v1333_v40, %v1299_v58 }
 0x17a   : > { %v1609_v7 = vsel %vm673_vm2, %v1608_v45, %v1602_v52 }
 0x17b   : > { %v1654_v11 = vmul.f32 %v1620_v41, %v1609_v7  ;;  %v1656_v56 = vmul.f32 %v1628_v43, %v1609_v7  ;;  %v1658_v31 = vmul.f32 %v1636_v33, %v1609_v7  ;;  %v1660_v44 = vmul.f32 %v1644_v42, %v1609_v7  ;;  %v1590_v50 = vpop.permute.xlu0 %1589 }
 0x17c   : > { %v1606_v62 = vsel %vm673_vm2, %v1605_v5, %v1590_v50 }
 0x17d   : > { %v1662_v53 = vadd.f32 %v1654_v11, %v1347_v8  ;;  %v1664_v2 = vadd.f32 %v1656_v56, %v1349_v14  ;;  %v1666_v28 = vadd.f32 %v1658_v31, %v1351_v4  ;;  %v1668_v47 = vadd.f32 %v1660_v44, %v1353_v15 }
 0x17e   : > { %v1653_v61 = vmul.f32 %v1616_v34, %v1606_v62  ;;  %v1655_v22 = vmul.f32 %v1624_v48, %v1606_v62  ;;  %v1657_v23 = vmul.f32 %v1632_v49, %v1606_v62  ;;  %v1659_v25 = vmul.f32 %v1640_v63, %v1606_v62 }
 0x17f   : > { %v1670_v27 = vadd.f32 %v1662_v53, %v2649_v60  ;;  %v1672_v3 = vadd.f32 %v1664_v2, %v2651_v9  ;;  %v1674_v26 = vadd.f32 %v1666_v28, %v2653_v38  ;;  %v1676_v51 = vadd.f32 %v1668_v47, %v2655_v29 }
 0x180   : > { %v1661_v32 = vadd.f32 %v1653_v61, %v1346_v30  ;;  %v1663_v35 = vadd.f32 %v1655_v22, %v1348_v1  ;;  %v1665_v10 = vadd.f32 %v1657_v23, %v1350_v37  ;;  %v1667_v12 = vadd.f32 %v1659_v25, %v1352_v46 }
 0x181   : > { %1678 = vst [vmem:[%s210_s28 + $0x8] sm:$0xff] %v1670_v27  ;;  %1680 = vst [vmem:[%s210_s28 + $0x18] sm:$0xff] %v1672_v3 }
 0x182   : > { %1682 = vst [vmem:[%s210_s28 + $0x28] sm:$0xff] %v1674_v26  ;;  %1684 = vst [vmem:[%s210_s28 + $0x38] sm:$0xff] %v1676_v51  ;;  %v1669_v60 = vadd.f32 %v1661_v32, %v2658_v55  ;;  %v1671_v9 = vadd.f32 %v1663_v35, %v2660_v0  ;;  %v1673_v38 = vadd.f32 %v1665_v10, %v2662_v18 }
 0x183   : > { %v1675_v29 = vadd.f32 %v1667_v12, %v2664_v20 }
 0x184   : > { %1677 = vst [vmem:[%s210_s28] sm:$0xff] %v1669_v60  ;;  %1679 = vst [vmem:[%s210_s28 + $0x10] sm:$0xff] %v1671_v9 }
 0x185   : > { %1681 = vst [vmem:[%s210_s28 + $0x20] sm:$0xff] %v1673_v38  ;;  %1683 = vst [vmem:[%s210_s28 + $0x30] sm:$0xff] %v1675_v29 }
 0x186   : > { %2001 = shalt.err (!%p1998_p7)
}
 0x187   : > { %s2002_s17 = scalar_lea.hbm %s2719_s5, 1024  ;;  %s2006_s30 = scalar_lea.hbm %s2766_s3, 2048 }
 0x188   : > { %p2003_p10 = scmp.ne.s32.totalorder %s2719_s5, %s2002_s17  ;;  %p2007_p0 = scmp.lt.u32.totalorder %s2719_s5, %s2766_s3 }
 0x189   : > { %p2008_p9 = scmp.lt.u32.totalorder %s2006_s30, %s2002_s17  ;;  %p2010_p2 = scmp.lt.u32.totalorder %s2002_s17, %s2719_s5 }
 0x18a   : > { %p2004_p13 = pnand %p2003_p10, %p2215_p6 }
 0x18b   : > { %p2009_p11 = por %p2008_p9, %p2007_p0 }
 0x18c   : > { %p2005_p5 = pneg %p2004_p13 }
 0x18d   : > { %p2011_p1 = por %p2010_p2, %p2009_p11 }
 0x18f   : > { %p2012_p4 = pnand %p2011_p1, %p2005_p5 }
 0x191   : > { %2015 = shalt.err (!%p2012_p4)
}
 0x192   : > { %1829 = dma.vmem_to_hbm [thread:$0]  (%p2215_p6), %s2721_s22, 1024, %s2719_s5, %s1686_s6  }
 0x193 PF: > { %s1712_s24 = sand.u32 1, %s2046_s12   ;;  %p2781_p8 = scmp.ne.s32.totalorder %s2771_s19, 0 }
 0x194   : > { %p2782_p12 = scmp.ge.s32.totalorder %s2058_s15, 2  ;;  %s1713_s21 = scalar_lea.sflag [#allocation4], %s1712_s24 }
 0x196   : > { %p1843_p3 = pnand %p2782_p12, %p2781_p8 }
 0x198   : > { %2041 = dma.done.wait (!%p1843_p3), %s1713_s21, 1024  }
 0x199   : > { %2043 = vsyncadd (!%p1843_p3), %s1713_s21, 4294966272  ;;  %p17_p7 = scmp.ge.s32.totalorder %s2152_s26, 4   ;;  %s2783_s12 = smov %s2050_s13 }
 0x19a   : > { %s2784_s13 = smov %s2054_s14  ;;  %s2785_s14 = smov %s2211_s25 }
 0x19b   : > { %s2786_s15 = smov %s2152_s26  ;;  %19 = sbr.rel (!%p17_p7) target bundleno = 6 (0x6), region = 87 }
 0x1a2   :  { %1718 = vsyncpa [#allocation3], 1 }
 0x1a3   :  { %1720 = vsyncpa [#allocation3 + $0x1], 1 }
 0x1a4   :  { %1721 = vsyncpa [#allocation6], 1 }
 0x1a5   :  { %1722 = vsyncpa [#allocation4], 1 }
 0x1a6   :  { %1724 = vsyncpa [#allocation4 + $0x1], 1 }

</bundles_post_ra>
